<compile_context>
chip_gen: v5e
topology: v5e:2x2
jax: 0.10.0
libtpu: 0.0.40
codegen_flags: <defaults>
</compile_context>

<pallas_src>
import functools

import jax
import jax.numpy as jnp
from jax.experimental import pallas as pl
from jax.experimental.pallas import tpu as pltpu


def basic_block_kernel(x_ref, w1t_ref, s1_ref, b1_ref, w2t_ref, s2_ref, b2_ref,
                       masks_ref, o_ref, *, W):
    """One batch element. x_ref: (Cin, H*W); o_ref: (Cout, H*W)."""
    L = x_ref.shape[1]                                    # H * W (lane axis)
    Cout = w2t_ref.shape[1]

    # Residual / conv1 input, kept in f32 for the elementwise tail.
    x = x_ref[...].astype(jnp.float32)                    # (Cin, L)

    # ---- conv1 (1x1) == channel matmul, bf16 MXU inputs, f32 accumulate ----
    y = jnp.dot(w1t_ref[...], x.astype(jnp.bfloat16),
                preferred_element_type=jnp.float32)        # (C0, L)
    # bn1 (folded scale/bias, (C0,1) broadcast over lanes) + LeakyReLU(0.1)
    y = y * s1_ref[...] + b1_ref[...]
    y = jnp.where(y > 0, y, 0.1 * y)

    # ---- conv2 (3x3, pad=1): 9 lane-rolled, boundary-masked taps -----------
    # Tap (oy, ox) needs y[c, i+oy, j+ox] == y_flat[c, p + oy*W + ox]; the
    # circular wrap of the roll lands exactly on positions the 0/1 mask zeroes.
    acc = jnp.zeros((Cout, L), jnp.float32)
    t = 0
    for oy in (-1, 0, 1):
        for ox in (-1, 0, 1):
            d = oy * W + ox                                # flat source offset
            shifted = y if d == 0 else pltpu.roll(y, (-d) % L, axis=1)
            tap = (shifted * masks_ref[t:t + 1, :]).astype(jnp.bfloat16)
            acc = acc + jnp.dot(w2t_ref[t], tap,           # (Cout,C0)@(C0,L)
                                preferred_element_type=jnp.float32)
            t += 1

    # ---- bn2 + LeakyReLU(0.1) + residual add (all f32) ---------------------
    z = acc * s2_ref[...] + b2_ref[...]
    z = jnp.where(z > 0, z, 0.1 * z)
    o_ref[...] = (z + x).astype(o_ref.dtype)               # lane-dense store


def basic_block(x_nchw, kernel_params):
    """x_nchw: (B, Cin, H, W) float32 (PyTorch layout)."""
    w1t, s1, b1, w2t, s2, b2, masks = kernel_params
    B, Cin, H, W = x_nchw.shape
    C0 = w1t.shape[0]
    Cout = w2t.shape[1]
    assert Cout == Cin, "residual add requires planes[1] == inplanes"
    L = H * W

    # NCHW is already channel-major / spatial-minor: this reshape is free and
    # puts H*W straight onto the lane axis (no transposes in the hot path).
    x = x_nchw.reshape(B, Cin, L)

    out = pl.pallas_call(
        functools.partial(basic_block_kernel, W=W),
        out_shape=jax.ShapeDtypeStruct((B, Cout, L), x_nchw.dtype),
        grid_spec=pltpu.PrefetchScalarGridSpec(
            num_scalar_prefetch=0,
            grid=(B,),
            in_specs=[
                pl.BlockSpec((None, Cin, L), lambda b: (b, 0, 0)),
                pl.BlockSpec((C0, Cin), lambda b: (0, 0)),
                pl.BlockSpec((C0, 1), lambda b: (0, 0)),
                pl.BlockSpec((C0, 1), lambda b: (0, 0)),
                pl.BlockSpec((9, Cout, C0), lambda b: (0, 0, 0)),
                pl.BlockSpec((Cout, 1), lambda b: (0, 0)),
                pl.BlockSpec((Cout, 1), lambda b: (0, 0)),
                pl.BlockSpec((9, L), lambda b: (0, 0)),
            ],
            out_specs=pl.BlockSpec((None, Cout, L), lambda b: (b, 0, 0)),
        ),
        compiler_params=pltpu.CompilerParams(
            dimension_semantics=("parallel",)),   # batch blocks are independent
    )(x, w1t, s1, b1, w2t, s2, b2, masks)

    return out.reshape(B, Cout, H, W)


def init_params(key, inplanes, planes):
    """Synthetic BasicBlock params; eval-mode BN folded into scale/bias."""
    c0, c1 = planes
    eps = 1e-5
    k = jax.random.split(key, 10)
    w1 = 0.1 * jax.random.normal(k[0], (c0, inplanes), jnp.float32)   # (C0, Cin)
    w2 = 0.1 * jax.random.normal(k[1], (3, 3, c0, c1), jnp.float32)   # HWIO

    g1 = 1.0 + 0.1 * jax.random.normal(k[2], (c0,), jnp.float32)
    be1 = 0.1 * jax.random.normal(k[3], (c0,), jnp.float32)
    m1 = 0.1 * jax.random.normal(k[4], (c0,), jnp.float32)
    v1 = jax.random.uniform(k[5], (c0,), jnp.float32, minval=0.5, maxval=1.5)

    g2 = 1.0 + 0.1 * jax.random.normal(k[6], (c1,), jnp.float32)
    be2 = 0.1 * jax.random.normal(k[7], (c1,), jnp.float32)
    m2 = 0.1 * jax.random.normal(k[8], (c1,), jnp.float32)
    v2 = jax.random.uniform(k[9], (c1,), jnp.float32, minval=0.5, maxval=1.5)

    s1 = g1 / jnp.sqrt(v1 + eps)
    b1 = be1 - m1 * s1
    s2 = g2 / jnp.sqrt(v2 + eps)
    b2 = be2 - m2 * s2
    return (w1, s1, b1, w2, s2, b2)


def prepare_kernel_params(params, H, W):
    """Host-side layout prep: no in-kernel weight reshuffling / broadcasts."""
    w1, s1, b1, w2, s2, b2 = params
    C0, _ = w1.shape
    Cout = w2.shape[3]

    w1t = w1.astype(jnp.bfloat16)                                     # (C0, Cin)
    # conv2 HWIO (3,3,C0,Cout) -> per-tap transposed (9, Cout, C0), bf16.
    w2t = jnp.transpose(w2.reshape(9, C0, Cout), (0, 2, 1)).astype(jnp.bfloat16)

    # Folded BN scale/bias as (C, 1): broadcasts over the lane-dense H*W axis.
    s1 = s1.reshape(C0, 1)
    b1 = b1.reshape(C0, 1)
    s2 = s2.reshape(Cout, 1)
    b2 = b2.reshape(Cout, 1)

    # 0/1 boundary masks for the 9 conv2 taps over the flattened H*W axis
    # (zero-padding of the 3x3 conv + suppression of the roll's wrap-around).
    ii, jj = jnp.meshgrid(jnp.arange(H), jnp.arange(W), indexing="ij")
    masks = []
    for oy in (-1, 0, 1):
        for ox in (-1, 0, 1):
            m = ((ii + oy >= 0) & (ii + oy < H) &
                 (jj + ox >= 0) & (jj + ox < W))
            masks.append(m.reshape(-1))
    masks = jnp.stack(masks).astype(jnp.float32)                      # (9, H*W)

    return (w1t, s1, b1, w2t, s2, b2, masks)


def ref_forward(x_nchw, params):
    """Pure-JAX reference (same bf16-MXU-input / f32-accumulate numerics)."""
    w1, s1, b1, w2, s2, b2 = params
    x = jnp.transpose(x_nchw, (0, 2, 3, 1))                           # NHWC
    y = jnp.einsum("bhwc,oc->bhwo", x.astype(jnp.bfloat16),
                   w1.astype(jnp.bfloat16),
                   preferred_element_type=jnp.float32)
    y = y * s1 + b1
    y = jnp.where(y > 0, y, 0.1 * y)
    z = jax.lax.conv_general_dilated(
        y.astype(jnp.bfloat16), w2.astype(jnp.bfloat16),
        window_strides=(1, 1), padding="SAME",
        dimension_numbers=("NHWC", "HWIO", "NHWC"),
        preferred_element_type=jnp.float32)
    z = z * s2 + b2
    z = jnp.where(z > 0, z, 0.1 * z)
    out = z + x
    return jnp.transpose(out, (0, 3, 1, 2))


if __name__ == "__main__":
    key = jax.random.PRNGKey(0)
    kx, kp = jax.random.split(key)

    B, inplanes, H, W = 2, 4, 16, 16
    planes = (2, 4)   # (planes[0], planes[1]); planes[1] == inplanes

    x = jax.random.normal(kx, (B, inplanes, H, W), jnp.float32)
    params = init_params(kp, inplanes, planes)
    kparams = prepare_kernel_params(params, H, W)

    out = basic_block(x, kparams)
    out = jax.block_until_ready(out)

    ref = ref_forward(x, params)
    assert out.shape == (B, planes[1], H, W)
    assert jnp.allclose(out, ref, atol=2e-2, rtol=2e-2), "mismatch vs reference"
    print("KERNEL_OK")
</pallas_src>

<mosaic_0001>
module attributes {stable_mosaic.version = 11 : i64} {
  func.func @basic_block_kernel(%arg0: i32, %arg1: memref<1x4x256xf32, #tpu.memory_space<vmem>>, %arg2: memref<2x4xbf16, #tpu.memory_space<vmem>>, %arg3: memref<2x1xf32, #tpu.memory_space<vmem>>, %arg4: memref<2x1xf32, #tpu.memory_space<vmem>>, %arg5: memref<9x4x2xbf16, #tpu.memory_space<vmem>>, %arg6: memref<4x1xf32, #tpu.memory_space<vmem>>, %arg7: memref<4x1xf32, #tpu.memory_space<vmem>>, %arg8: memref<9x256xf32, #tpu.memory_space<vmem>>, %arg9: memref<1x4x256xf32, #tpu.memory_space<vmem>>) attributes {dimension_semantics = [#tpu.dimension_semantics<parallel>], iteration_bounds = array<i64: 2>, scalar_prefetch = 0 : i64, scratch_operands = 0 : i64, tpu.core_type = #tpu.core_type<tc>, window_params = [{transform_indices = @transform_0, window_bounds = array<i64: 1, 4, 256>}, {pipeline_mode = #tpu.pipeline_mode<synchronous>, transform_indices = @transform_1, window_bounds = array<i64: 2, 4>}, {pipeline_mode = #tpu.pipeline_mode<synchronous>, transform_indices = @transform_2, window_bounds = array<i64: 2, 1>}, {pipeline_mode = #tpu.pipeline_mode<synchronous>, transform_indices = @transform_3, window_bounds = array<i64: 2, 1>}, {pipeline_mode = #tpu.pipeline_mode<synchronous>, transform_indices = @transform_4, window_bounds = array<i64: 9, 4, 2>}, {pipeline_mode = #tpu.pipeline_mode<synchronous>, transform_indices = @transform_5, window_bounds = array<i64: 4, 1>}, {pipeline_mode = #tpu.pipeline_mode<synchronous>, transform_indices = @transform_6, window_bounds = array<i64: 4, 1>}, {pipeline_mode = #tpu.pipeline_mode<synchronous>, transform_indices = @transform_7, window_bounds = array<i64: 9, 256>}, {transform_indices = @transform_8, window_bounds = array<i64: 1, 4, 256>}]} {
    %c0 = arith.constant 0 : index
    %c0_0 = arith.constant 0 : index
    %c0_1 = arith.constant 0 : index
    %0 = vector.load %arg1[%c0, %c0_0, %c0_1] : memref<1x4x256xf32, #tpu.memory_space<vmem>>, vector<1x4x256xf32>
    %1 = vector.shape_cast %0 : vector<1x4x256xf32> to vector<4x256xf32>
    %c0_2 = arith.constant 0 : index
    %c0_3 = arith.constant 0 : index
    %2 = vector.load %arg2[%c0_2, %c0_3] : memref<2x4xbf16, #tpu.memory_space<vmem>>, vector<2x4xbf16>
    %3 = arith.truncf %1 : vector<4x256xf32> to vector<4x256xbf16>
    %cst = arith.constant dense<0.000000e+00> : vector<2x256xf32>
    %4 = tpu.matmul %2, %3, %cst {dimension_numbers = #tpu.dot_dimension_numbers<[1], [0], [0], [1], [0, 0, 1, 1], [], []>} : vector<2x4xbf16>, vector<4x256xbf16>, vector<2x256xf32> -> vector<2x256xf32>
    %c0_4 = arith.constant 0 : index
    %c0_5 = arith.constant 0 : index
    %5 = vector.load %arg3[%c0_4, %c0_5] : memref<2x1xf32, #tpu.memory_space<vmem>>, vector<2x1xf32>
    %6 = vector.broadcast %5 : vector<2x1xf32> to vector<2x256xf32>
    %7 = arith.mulf %4, %6 : vector<2x256xf32>
    %c0_6 = arith.constant 0 : index
    %c0_7 = arith.constant 0 : index
    %8 = vector.load %arg4[%c0_6, %c0_7] : memref<2x1xf32, #tpu.memory_space<vmem>>, vector<2x1xf32>
    %9 = vector.broadcast %8 : vector<2x1xf32> to vector<2x256xf32>
    %10 = arith.addf %7, %9 : vector<2x256xf32>
    %cst_8 = arith.constant 0.000000e+00 : f32
    %11 = vector.broadcast %cst_8 : f32 to vector<2x256xf32>
    %12 = arith.cmpf ogt, %10, %11 : vector<2x256xf32>
    %cst_9 = arith.constant 1.000000e-01 : f32
    %13 = vector.broadcast %cst_9 : f32 to vector<2x256xf32>
    %14 = arith.mulf %13, %10 : vector<2x256xf32>
    %15 = arith.select %12, %10, %14 : vector<2x256xi1>, vector<2x256xf32>
    %cst_10 = arith.constant 0.000000e+00 : f32
    %16 = vector.broadcast %cst_10 : f32 to vector<4x256xf32>
    %c17_i32 = arith.constant 17 : i32
    %17 = tpu.dynamic_rotate %15 by %c17_i32 dim 1 : vector<2x256xf32>, i32 -> vector<2x256xf32>
    %c0_11 = arith.constant 0 : index
    %c0_12 = arith.constant 0 : index
    %18 = vector.load %arg8[%c0_11, %c0_12] : memref<9x256xf32, #tpu.memory_space<vmem>>, vector<1x256xf32>
    %19 = vector.broadcast %18 : vector<1x256xf32> to vector<2x256xf32>
    %20 = arith.mulf %17, %19 : vector<2x256xf32>
    %21 = arith.truncf %20 : vector<2x256xf32> to vector<2x256xbf16>
    %c0_13 = arith.constant 0 : index
    %c0_14 = arith.constant 0 : index
    %c0_15 = arith.constant 0 : index
    %22 = vector.load %arg5[%c0_13, %c0_14, %c0_15] : memref<9x4x2xbf16, #tpu.memory_space<vmem>>, vector<1x4x2xbf16>
    %23 = vector.shape_cast %22 : vector<1x4x2xbf16> to vector<4x2xbf16>
    %cst_16 = arith.constant dense<0.000000e+00> : vector<4x256xf32>
    %24 = tpu.matmul %23, %21, %cst_16 {dimension_numbers = #tpu.dot_dimension_numbers<[1], [0], [0], [1], [0, 0, 1, 1], [], []>} : vector<4x2xbf16>, vector<2x256xbf16>, vector<4x256xf32> -> vector<4x256xf32>
    %25 = arith.addf %16, %24 : vector<4x256xf32>
    %c16_i32 = arith.constant 16 : i32
    %26 = tpu.dynamic_rotate %15 by %c16_i32 dim 1 : vector<2x256xf32>, i32 -> vector<2x256xf32>
    %c1 = arith.constant 1 : index
    %c0_17 = arith.constant 0 : index
    %27 = vector.load %arg8[%c1, %c0_17] : memref<9x256xf32, #tpu.memory_space<vmem>>, vector<1x256xf32>
    %28 = vector.broadcast %27 : vector<1x256xf32> to vector<2x256xf32>
    %29 = arith.mulf %26, %28 : vector<2x256xf32>
    %30 = arith.truncf %29 : vector<2x256xf32> to vector<2x256xbf16>
    %c1_18 = arith.constant 1 : index
    %c0_19 = arith.constant 0 : index
    %c0_20 = arith.constant 0 : index
    %31 = vector.load %arg5[%c1_18, %c0_19, %c0_20] : memref<9x4x2xbf16, #tpu.memory_space<vmem>>, vector<1x4x2xbf16>
    %32 = vector.shape_cast %31 : vector<1x4x2xbf16> to vector<4x2xbf16>
    %cst_21 = arith.constant dense<0.000000e+00> : vector<4x256xf32>
    %33 = tpu.matmul %32, %30, %cst_21 {dimension_numbers = #tpu.dot_dimension_numbers<[1], [0], [0], [1], [0, 0, 1, 1], [], []>} : vector<4x2xbf16>, vector<2x256xbf16>, vector<4x256xf32> -> vector<4x256xf32>
    %34 = arith.addf %25, %33 : vector<4x256xf32>
    %c15_i32 = arith.constant 15 : i32
    %35 = tpu.dynamic_rotate %15 by %c15_i32 dim 1 : vector<2x256xf32>, i32 -> vector<2x256xf32>
    %c2 = arith.constant 2 : index
    %c0_22 = arith.constant 0 : index
    %36 = vector.load %arg8[%c2, %c0_22] : memref<9x256xf32, #tpu.memory_space<vmem>>, vector<1x256xf32>
    %37 = vector.broadcast %36 : vector<1x256xf32> to vector<2x256xf32>
    %38 = arith.mulf %35, %37 : vector<2x256xf32>
    %39 = arith.truncf %38 : vector<2x256xf32> to vector<2x256xbf16>
    %c2_23 = arith.constant 2 : index
    %c0_24 = arith.constant 0 : index
    %c0_25 = arith.constant 0 : index
    %40 = vector.load %arg5[%c2_23, %c0_24, %c0_25] : memref<9x4x2xbf16, #tpu.memory_space<vmem>>, vector<1x4x2xbf16>
    %41 = vector.shape_cast %40 : vector<1x4x2xbf16> to vector<4x2xbf16>
    %cst_26 = arith.constant dense<0.000000e+00> : vector<4x256xf32>
    %42 = tpu.matmul %41, %39, %cst_26 {dimension_numbers = #tpu.dot_dimension_numbers<[1], [0], [0], [1], [0, 0, 1, 1], [], []>} : vector<4x2xbf16>, vector<2x256xbf16>, vector<4x256xf32> -> vector<4x256xf32>
    %43 = arith.addf %34, %42 : vector<4x256xf32>
    %c1_i32 = arith.constant 1 : i32
    %44 = tpu.dynamic_rotate %15 by %c1_i32 dim 1 : vector<2x256xf32>, i32 -> vector<2x256xf32>
    %c3 = arith.constant 3 : index
    %c0_27 = arith.constant 0 : index
    %45 = vector.load %arg8[%c3, %c0_27] : memref<9x256xf32, #tpu.memory_space<vmem>>, vector<1x256xf32>
    %46 = vector.broadcast %45 : vector<1x256xf32> to vector<2x256xf32>
    %47 = arith.mulf %44, %46 : vector<2x256xf32>
    %48 = arith.truncf %47 : vector<2x256xf32> to vector<2x256xbf16>
    %c3_28 = arith.constant 3 : index
    %c0_29 = arith.constant 0 : index
    %c0_30 = arith.constant 0 : index
    %49 = vector.load %arg5[%c3_28, %c0_29, %c0_30] : memref<9x4x2xbf16, #tpu.memory_space<vmem>>, vector<1x4x2xbf16>
    %50 = vector.shape_cast %49 : vector<1x4x2xbf16> to vector<4x2xbf16>
    %cst_31 = arith.constant dense<0.000000e+00> : vector<4x256xf32>
    %51 = tpu.matmul %50, %48, %cst_31 {dimension_numbers = #tpu.dot_dimension_numbers<[1], [0], [0], [1], [0, 0, 1, 1], [], []>} : vector<4x2xbf16>, vector<2x256xbf16>, vector<4x256xf32> -> vector<4x256xf32>
    %52 = arith.addf %43, %51 : vector<4x256xf32>
    %c4 = arith.constant 4 : index
    %c0_32 = arith.constant 0 : index
    %53 = vector.load %arg8[%c4, %c0_32] : memref<9x256xf32, #tpu.memory_space<vmem>>, vector<1x256xf32>
    %54 = vector.broadcast %53 : vector<1x256xf32> to vector<2x256xf32>
    %55 = arith.mulf %15, %54 : vector<2x256xf32>
    %56 = arith.truncf %55 : vector<2x256xf32> to vector<2x256xbf16>
    %c4_33 = arith.constant 4 : index
    %c0_34 = arith.constant 0 : index
    %c0_35 = arith.constant 0 : index
    %57 = vector.load %arg5[%c4_33, %c0_34, %c0_35] : memref<9x4x2xbf16, #tpu.memory_space<vmem>>, vector<1x4x2xbf16>
    %58 = vector.shape_cast %57 : vector<1x4x2xbf16> to vector<4x2xbf16>
    %cst_36 = arith.constant dense<0.000000e+00> : vector<4x256xf32>
    %59 = tpu.matmul %58, %56, %cst_36 {dimension_numbers = #tpu.dot_dimension_numbers<[1], [0], [0], [1], [0, 0, 1, 1], [], []>} : vector<4x2xbf16>, vector<2x256xbf16>, vector<4x256xf32> -> vector<4x256xf32>
    %60 = arith.addf %52, %59 : vector<4x256xf32>
    %c255_i32 = arith.constant 255 : i32
    %61 = tpu.dynamic_rotate %15 by %c255_i32 dim 1 : vector<2x256xf32>, i32 -> vector<2x256xf32>
    %c5 = arith.constant 5 : index
    %c0_37 = arith.constant 0 : index
    %62 = vector.load %arg8[%c5, %c0_37] : memref<9x256xf32, #tpu.memory_space<vmem>>, vector<1x256xf32>
    %63 = vector.broadcast %62 : vector<1x256xf32> to vector<2x256xf32>
    %64 = arith.mulf %61, %63 : vector<2x256xf32>
    %65 = arith.truncf %64 : vector<2x256xf32> to vector<2x256xbf16>
    %c5_38 = arith.constant 5 : index
    %c0_39 = arith.constant 0 : index
    %c0_40 = arith.constant 0 : index
    %66 = vector.load %arg5[%c5_38, %c0_39, %c0_40] : memref<9x4x2xbf16, #tpu.memory_space<vmem>>, vector<1x4x2xbf16>
    %67 = vector.shape_cast %66 : vector<1x4x2xbf16> to vector<4x2xbf16>
    %cst_41 = arith.constant dense<0.000000e+00> : vector<4x256xf32>
    %68 = tpu.matmul %67, %65, %cst_41 {dimension_numbers = #tpu.dot_dimension_numbers<[1], [0], [0], [1], [0, 0, 1, 1], [], []>} : vector<4x2xbf16>, vector<2x256xbf16>, vector<4x256xf32> -> vector<4x256xf32>
    %69 = arith.addf %60, %68 : vector<4x256xf32>
    %c241_i32 = arith.constant 241 : i32
    %70 = tpu.dynamic_rotate %15 by %c241_i32 dim 1 : vector<2x256xf32>, i32 -> vector<2x256xf32>
    %c6 = arith.constant 6 : index
    %c0_42 = arith.constant 0 : index
    %71 = vector.load %arg8[%c6, %c0_42] : memref<9x256xf32, #tpu.memory_space<vmem>>, vector<1x256xf32>
    %72 = vector.broadcast %71 : vector<1x256xf32> to vector<2x256xf32>
    %73 = arith.mulf %70, %72 : vector<2x256xf32>
    %74 = arith.truncf %73 : vector<2x256xf32> to vector<2x256xbf16>
    %c6_43 = arith.constant 6 : index
    %c0_44 = arith.constant 0 : index
    %c0_45 = arith.constant 0 : index
    %75 = vector.load %arg5[%c6_43, %c0_44, %c0_45] : memref<9x4x2xbf16, #tpu.memory_space<vmem>>, vector<1x4x2xbf16>
    %76 = vector.shape_cast %75 : vector<1x4x2xbf16> to vector<4x2xbf16>
    %cst_46 = arith.constant dense<0.000000e+00> : vector<4x256xf32>
    %77 = tpu.matmul %76, %74, %cst_46 {dimension_numbers = #tpu.dot_dimension_numbers<[1], [0], [0], [1], [0, 0, 1, 1], [], []>} : vector<4x2xbf16>, vector<2x256xbf16>, vector<4x256xf32> -> vector<4x256xf32>
    %78 = arith.addf %69, %77 : vector<4x256xf32>
    %c240_i32 = arith.constant 240 : i32
    %79 = tpu.dynamic_rotate %15 by %c240_i32 dim 1 : vector<2x256xf32>, i32 -> vector<2x256xf32>
    %c7 = arith.constant 7 : index
    %c0_47 = arith.constant 0 : index
    %80 = vector.load %arg8[%c7, %c0_47] : memref<9x256xf32, #tpu.memory_space<vmem>>, vector<1x256xf32>
    %81 = vector.broadcast %80 : vector<1x256xf32> to vector<2x256xf32>
    %82 = arith.mulf %79, %81 : vector<2x256xf32>
    %83 = arith.truncf %82 : vector<2x256xf32> to vector<2x256xbf16>
    %c7_48 = arith.constant 7 : index
    %c0_49 = arith.constant 0 : index
    %c0_50 = arith.constant 0 : index
    %84 = vector.load %arg5[%c7_48, %c0_49, %c0_50] : memref<9x4x2xbf16, #tpu.memory_space<vmem>>, vector<1x4x2xbf16>
    %85 = vector.shape_cast %84 : vector<1x4x2xbf16> to vector<4x2xbf16>
    %cst_51 = arith.constant dense<0.000000e+00> : vector<4x256xf32>
    %86 = tpu.matmul %85, %83, %cst_51 {dimension_numbers = #tpu.dot_dimension_numbers<[1], [0], [0], [1], [0, 0, 1, 1], [], []>} : vector<4x2xbf16>, vector<2x256xbf16>, vector<4x256xf32> -> vector<4x256xf32>
    %87 = arith.addf %78, %86 : vector<4x256xf32>
    %c239_i32 = arith.constant 239 : i32
    %88 = tpu.dynamic_rotate %15 by %c239_i32 dim 1 : vector<2x256xf32>, i32 -> vector<2x256xf32>
    %c8 = arith.constant 8 : index
    %c0_52 = arith.constant 0 : index
    %89 = vector.load %arg8[%c8, %c0_52] : memref<9x256xf32, #tpu.memory_space<vmem>>, vector<1x256xf32>
    %90 = vector.broadcast %89 : vector<1x256xf32> to vector<2x256xf32>
    %91 = arith.mulf %88, %90 : vector<2x256xf32>
    %92 = arith.truncf %91 : vector<2x256xf32> to vector<2x256xbf16>
    %c8_53 = arith.constant 8 : index
    %c0_54 = arith.constant 0 : index
    %c0_55 = arith.constant 0 : index
    %93 = vector.load %arg5[%c8_53, %c0_54, %c0_55] : memref<9x4x2xbf16, #tpu.memory_space<vmem>>, vector<1x4x2xbf16>
    %94 = vector.shape_cast %93 : vector<1x4x2xbf16> to vector<4x2xbf16>
    %cst_56 = arith.constant dense<0.000000e+00> : vector<4x256xf32>
    %95 = tpu.matmul %94, %92, %cst_56 {dimension_numbers = #tpu.dot_dimension_numbers<[1], [0], [0], [1], [0, 0, 1, 1], [], []>} : vector<4x2xbf16>, vector<2x256xbf16>, vector<4x256xf32> -> vector<4x256xf32>
    %96 = arith.addf %87, %95 : vector<4x256xf32>
    %c0_57 = arith.constant 0 : index
    %c0_58 = arith.constant 0 : index
    %97 = vector.load %arg6[%c0_57, %c0_58] : memref<4x1xf32, #tpu.memory_space<vmem>>, vector<4x1xf32>
    %98 = vector.broadcast %97 : vector<4x1xf32> to vector<4x256xf32>
    %99 = arith.mulf %96, %98 : vector<4x256xf32>
    %c0_59 = arith.constant 0 : index
    %c0_60 = arith.constant 0 : index
    %100 = vector.load %arg7[%c0_59, %c0_60] : memref<4x1xf32, #tpu.memory_space<vmem>>, vector<4x1xf32>
    %101 = vector.broadcast %100 : vector<4x1xf32> to vector<4x256xf32>
    %102 = arith.addf %99, %101 : vector<4x256xf32>
    %cst_61 = arith.constant 0.000000e+00 : f32
    %103 = vector.broadcast %cst_61 : f32 to vector<4x256xf32>
    %104 = arith.cmpf ogt, %102, %103 : vector<4x256xf32>
    %cst_62 = arith.constant 1.000000e-01 : f32
    %105 = vector.broadcast %cst_62 : f32 to vector<4x256xf32>
    %106 = arith.mulf %105, %102 : vector<4x256xf32>
    %107 = arith.select %104, %102, %106 : vector<4x256xi1>, vector<4x256xf32>
    %108 = arith.addf %107, %1 : vector<4x256xf32>
    %c0_63 = arith.constant 0 : index
    %c0_64 = arith.constant 0 : index
    %c0_65 = arith.constant 0 : index
    %109 = vector.load %arg9[%c0_63, %c0_64, %c0_65] : memref<1x4x256xf32, #tpu.memory_space<vmem>>, vector<1x4x256xf32>
    %110 = vector.shape_cast %109 : vector<1x4x256xf32> to vector<4x256xf32>
    %111 = vector.shape_cast %108 : vector<4x256xf32> to vector<1x4x256xf32>
    tpu.vector_store %arg9[%c0_63, %c0_64, %c0_65], %111 {strides = array<i32>} : memref<1x4x256xf32, #tpu.memory_space<vmem>>, vector<1x4x256xf32>,
    return
  }
  func.func @transform_0(%arg0: i32) -> (i32, i32, i32) {
    %c0_i32 = arith.constant 0 : i32
    %c0_i32_0 = arith.constant 0 : i32
    %c0_i32_1 = arith.constant 0 : i32
    return %arg0, %c0_i32, %c0_i32_0 : i32, i32, i32
  }
  func.func @transform_1(%arg0: i32) -> (i32, i32) {
    %c0_i32 = arith.constant 0 : i32
    %c0_i32_0 = arith.constant 0 : i32
    %c0_i32_1 = arith.constant 0 : i32
    return %c0_i32, %c0_i32_0 : i32, i32
  }
  func.func @transform_2(%arg0: i32) -> (i32, i32) {
    %c0_i32 = arith.constant 0 : i32
    %c0_i32_0 = arith.constant 0 : i32
    %c0_i32_1 = arith.constant 0 : i32
    return %c0_i32, %c0_i32_0 : i32, i32
  }
  func.func @transform_3(%arg0: i32) -> (i32, i32) {
    %c0_i32 = arith.constant 0 : i32
    %c0_i32_0 = arith.constant 0 : i32
    %c0_i32_1 = arith.constant 0 : i32
    return %c0_i32, %c0_i32_0 : i32, i32
  }
  func.func @transform_4(%arg0: i32) -> (i32, i32, i32) {
    %c0_i32 = arith.constant 0 : i32
    %c0_i32_0 = arith.constant 0 : i32
    %c0_i32_1 = arith.constant 0 : i32
    %c0_i32_2 = arith.constant 0 : i32
    return %c0_i32, %c0_i32_0, %c0_i32_1 : i32, i32, i32
  }
  func.func @transform_5(%arg0: i32) -> (i32, i32) {
    %c0_i32 = arith.constant 0 : i32
    %c0_i32_0 = arith.constant 0 : i32
    %c0_i32_1 = arith.constant 0 : i32
    return %c0_i32, %c0_i32_0 : i32, i32
  }
  func.func @transform_6(%arg0: i32) -> (i32, i32) {
    %c0_i32 = arith.constant 0 : i32
    %c0_i32_0 = arith.constant 0 : i32
    %c0_i32_1 = arith.constant 0 : i32
    return %c0_i32, %c0_i32_0 : i32, i32
  }
  func.func @transform_7(%arg0: i32) -> (i32, i32) {
    %c0_i32 = arith.constant 0 : i32
    %c0_i32_0 = arith.constant 0 : i32
    %c0_i32_1 = arith.constant 0 : i32
    return %c0_i32, %c0_i32_0 : i32, i32
  }
  func.func @transform_8(%arg0: i32) -> (i32, i32, i32) {
    %c0_i32 = arith.constant 0 : i32
    %c0_i32_0 = arith.constant 0 : i32
    %c0_i32_1 = arith.constant 0 : i32
    return %arg0, %c0_i32, %c0_i32_0 : i32, i32, i32
  }
}

</mosaic_0001>

<bundles_post_ra>
// kernel: tpu_custom_call.1
= control target key start
LH: loop header
LB: loop body
LE: loop exit
PB: predicated region body
PF: predicated region fallthrough
CT: control target
= control target key end

     0   :  { %13 = vsyncpa [#allocation3], 0  ;;  %s1472_s0 = inlined_call_operand.vmem [shape: f32[2,4,256], index: 0, kind: input, shape index: {}]   ;;  %s1473_s1 = inlined_call_operand.vmem [shape: bf16[2,4], index: 1, kind: input, shape index: {}]   ;;  %s1474_s2 = inlined_call_operand.vmem [shape: f32[2,1], index: 2, kind: input, shape index: {}]   ;;  %s1475_s3 = inlined_call_operand.vmem [shape: f32[2,1], index: 3, kind: input, shape index: {}]   ;;  %s1476_s4 = inlined_call_operand.vmem [shape: bf16[9,4,2], index: 4, kind: input, shape index: {}]   ;;  %s1477_s5 = inlined_call_operand.vmem [shape: f32[4,1], index: 5, kind: input, shape index: {}]   ;;  %s1478_s6 = inlined_call_operand.vmem [shape: f32[4,1], index: 6, kind: input, shape index: {}]   ;;  %s1479_s7 = inlined_call_operand.hbm [shape: f32[9,256], index: 7, kind: input, shape index: {}]   ;;  %s1480_s8 = inlined_call_operand.hbm [shape: f32[2,4,256], index: 8, kind: output, shape index: {}]  }
   0x1   :  { %14 = vsyncpa [#allocation4], 0 }
   0x2   :  { %16 = vsyncpa [#allocation4 + $0x1], 0  ;;  %s1281_s27 = smov 0   ;;  %s1283_s28 = smov 0  }
   0x3   :  { %s1285_s29 = smov 0   ;;  %s1287_s30 = smov 0  }
   0x4 LB: > { %s1302_s9 = sadd.s32 4294967295, %s1222_s30   ;;  %s1019_s10 = sadd.s32 4294967294, %s1222_s30   ;;  %s1222_s30 = sphi %s1287_s30, %s1486_s30   ;;  %s1218_s29 = sphi %s1285_s29, %s1485_s29   ;;  %s1214_s28 = sphi %s1283_s28, %s1484_s28   ;;  %s1210_s27 = sphi %s1281_s27, %s1483_s27  }
   0x5   : > { %s1306_s11 = sadd.s32 1, %s1222_s30   ;;  %s202_s12 = sadd.s32 1, %s1218_s29 }
   0x6   : > { %s199_s13 = ssub.s32 %s1222_s30, %s1306_s11  ;;  %p212_p0 = scmp.ne.s32.totalorder %s1218_s29, %s1214_s28 }
   0x7   : > { %p200_p1 = scmp.eq.s32.totalorder %s199_s13, 0  ;;  %p213_p2 = scmp.eq.s32.totalorder %s1302_s9, 1 }
   0x8   : > { %p218_p3 = scmp.ne.s32.totalorder %s1214_s28, %s1210_s27  ;;  %p219_p4 = scmp.eq.s32.totalorder %s1019_s10, 1 }
   0x9   : > { %s1317_s14 = scalar_select %p200_p1, %s1218_s29, %s202_s12  }
   0xa   : > { %p1319_p5 = por %p213_p2, %p212_p0  ;;  %p1323_p6 = por %p219_p4, %p218_p3 }
   0xb   : > { %p1020_p7 = scmp.ge.s32.totalorder %s1222_s30, 1  ;;  %p226_p8 = scmp.lt.s32.totalorder %s1222_s30, 3 }
   0xc   : > { %p1077_p9 = scmp.eq.s32.totalorder %s1302_s9, 0  ;;  %s255_s19 = sshll.u32 %s1479_s7, 4  ;;  %s256_s19 = int_to_ptr.hbm [resolvable:$true] %s255_s19 }
   0xd   : > { %p227_p10 = pnand %p1020_p7, %p226_p8  ;;  %s1224_s20 = smov [#allocation2]  }
   0xe   : > { %s257_s21 = sshll.u32 %s1224_s20, 4  ;;  %s1225_s22 = smov 256   ;;  %s258_s21 = int_to_ptr.vmem [resolvable:$true] %s257_s21 }
   0xf   : > { %p1069_p11 = pneg %p227_p10  ;;  %s1226_s23 = smov 16  }
  0x10   : > { %281 = sbr.rel (%p227_p10) target bundleno = 522 (0x20a), region = 52 }
  0x11   : > { %p1070_p12 = pnand %p1077_p9, %p1069_p11 }
  0x13   : > { %1072 = dma.hbm_to_vmem [thread:$0]  (!%p1070_p12), %s256_s19, 512, %s258_s21, [#allocation3], %s1225_s22, %s1225_s22, %s1226_s23  }
  0x15   : > { %1201 = dma.done.wait (%p1077_p9), [#allocation3], 512  }
  0x16   : > { %1203 = vsyncadd (%p1077_p9), [#allocation3], 4294966784  ;;  %p316_p13 = scmp.lt.s32.totalorder %s1302_s9, 1  ;;  %v1227_v0 = vmov 0   ;;  %v369_v1 = vld [vmem:[%s1474_s2] sm:$0x3]  ;;  %v395_v27 = vlaneseq }
  0x17   : > { %1124 = vset.pattern.permute.xlu0 %v1227_v0  ;;  %1125 = vset.pattern.permute.xlu1 %v1227_v0  ;;  %v377_v3 = vld [vmem:[%s1475_s3] sm:$0x3]  ;;  %vm336_vm0 = vcmask 1041408   ;;  %vm332_vm1 = vcmask 31744   ;;  %s1228_s22 = smov 17   ;;  %s1229_s23 = smov 15  }
  0x18   : > { %s317_s24 = scalar_select %p316_p13, %s1302_s9, 1  ;;  %372 = vperm.xlu0 %1124, %v369_v1   ;;  %v323_v10 = vld [vmem:[%s1473_s1] sm:$0x1]  ;;  %v1356_v28 = vand.u32 127, %v395_v27  ;;  %vm435_vm7 = vcmask 1040384   ;;  %vm431_vm9 = vcmask 15360  }
  0x19   : > { %s1232_s26 = smov 127   ;;  %s1233_s10 = smov 111   ;;  %v895_v25 = vld [vmem:[%s1477_s5] sm:$0xf] }
  0x1a   : > { %s1061_s25 = sshll.u32 %s317_s24, 3  ;;  %s1230_s24 = smov 16   ;;  %v511_v30 = vld [vmem:[#allocation2 + $0x2] ss:$8 sm:$0x3]  ;;  %vm507_vm4 = vcmp.lt.s32.totalorder %v1356_v28, 15 }
  0x1b   : > { %s320_s12 = scalar_lea.vmem %s1472_s0, %s1061_s25  ;;  %s1231_s25 = smov 1   ;;  %v618_v33 = vld [vmem:[#allocation2 + $0x4] ss:$8 sm:$0x3]  ;;  %v513_v34 = vperm.slane %v511_v30, 0  ;;  %v514_v35 = vperm.slane %v511_v30, 1 }
  0x1c   : > { %v322_v2 = vld [vmem:[%s320_s12] sm:$0xff]  ;;  %s1234_s12 = smov 113   ;;  %s1235_s18 = smov 112   ;;  %v419_v36 = vld [vmem:[#allocation2 + $0x1] ss:$8 sm:$0x3] }
  0x1d   : > { %325 = vst [vmem:[#allocation1] ss:$2 sm:$0xff] %v322_v2  ;;  %v620_v39 = vperm.slane %v618_v33, 0  ;;  %v621_v40 = vperm.slane %v618_v33, 1  ;;  %vm415_vm5 = vcmp.lt.s32.totalorder %v1356_v28, 16  ;;  %v421_v41 = vperm.slane %v419_v36, 0 }
  0x1e   : > { %v422_v42 = vperm.slane %v419_v36, 1  ;;  %v568_v45 = vld [vmem:[#allocation2 + $0x3] ss:$8 sm:$0x3]  ;;  %vm564_vm6 = vcmp.lt.s32.totalorder %v1356_v28, 1  ;;  %vm397_vm8 = vcmp.lt.s32.totalorder %v1356_v28, 17 }
  0x1f   : > { %v400_v55 = vld [vmem:[#allocation2] ss:$8 sm:$0x3]  ;;  %v570_v56 = vperm.slane %v568_v45, 0  ;;  %v571_v57 = vperm.slane %v568_v45, 1  ;;  %vm728_vm10 = vcmp.lt.s32.totalorder %v1356_v28, 113 }
  0x20   : > { %380 = vperm.xlu0 %1124, %v377_v3   ;;  %v402_v0 = vperm.slane %v400_v55, 0  ;;  %vm671_vm11 = vcmp.lt.s32.totalorder %v1356_v28, 127  ;;  %vm842_vm12 = vcmp.lt.s32.totalorder %v1356_v28, 111  ;;  %vm785_vm13 = vcmp.lt.s32.totalorder %v1356_v28, 112 }
  0x24   : > { %v326_v4 = vld.sshfl [vmem:[#allocation1] sm:$0xff pattern:$0x75316420]  ;;  %v327_v5 = vld.sshfl [vmem:[#allocation1 + $0x8] sm:$0xff pattern:$0x75316420] }
  0x25   : > { %v330_v6 = vpack.c.bf16 %v326_v4, %v326_v4  ;;  %v331_v7 = vpack.c.bf16 %v327_v5, %v327_v5  ;;  %917 = vst [vmem:[#allocation1] ss:$2 sm:$0xff] %v322_v2  ;;  %v403_v5 = vperm.slane %v400_v55, 1 }
  0x27   : > { %v338_v8 = vsel %vm336_vm0, %v330_v6, 0  ;;  %v341_v9 = vsel %vm336_vm0, %v331_v7, 0  ;;  %vm927_vm0 = vcmask 1043456  }
  0x28   : > { %350 = vmatpush.bf16.msra.mxu0 %v338_v8  ;;  %363 = vmatpush.bf16.msra.mxu1 %v341_v9 }
  0x2b   : > { %1028 = vmatmul.msk.bf16.vlgmr.msra.gmra.mxu0 %vm332_vm1, %v323_v10  ;;  %1029 = vmatmul.msk.bf16.vlgmr.msra.gmra.mxu1 %vm332_vm1, %v323_v10  ;;  %v1030_v10 = vld [vmem:[%s1476_s4 + $0x2] sm:$0x3] }
  0x8a   : > { %v373_v11 = vpop.permute.xlu0 %372 }
  0x92   : > { %v381_v15 = vpop.permute.xlu0 %380 }
  0xa8   : > { %v352_v12 = vpop.f32.mrf.mxu0  ;;  %v365_v13 = vpop.f32.mrf.mxu1 }
  0xa9   : > { %v375_v14 = vmul.f32 %v373_v11, %v352_v12  ;;  %v376_v17 = vmul.f32 %v373_v11, %v365_v13 }
  0xab   : > { %v383_v16 = vadd.f32 %v381_v15, %v375_v14  ;;  %v384_v20 = vadd.f32 %v381_v15, %v376_v17 }
  0xad   : > { %vm385_vm2 = vcmp.gt.f32.partialorder %v383_v16, 0.0  ;;  %v387_v18 = vmul.f32 0.1, %v383_v16  ;;  %v388_v23 = vmul.f32 0.1, %v384_v20  ;;  %vm386_vm3 = vcmp.gt.f32.partialorder %v384_v20, 0.0 }
  0xaf   : > { %v389_v19 = vsel %vm385_vm2, %v383_v16, %v387_v18  ;;  %v390_v24 = vsel %vm386_vm3, %v384_v20, %v388_v23  ;;  %v732_v20 = vld [vmem:[#allocation2 + $0x6] ss:$8 sm:$0x3] }
  0xb0   : > { %v367_v21 = vpop.f32.mrf.mxu1  ;;  %391 = vrot.lane.b32.xlu0 %v389_v19, %s1228_s22  ;;  %503 = vrot.lane.b32.xlu2 %v389_v19, %s1229_s23  ;;  %v354_v22 = vpop.f32.mrf.mxu0  ;;  %v624_v47 = vmul.f32 %v620_v39, %v389_v19  ;;  %v625_v51 = vmul.f32 %v621_v40, %v390_v24  ;;  %v735_v27 = vperm.slane %v732_v20, 1 }
  0xb1   : > { %411 = vrot.lane.b32.xlu1 %v389_v19, %s1230_s24 }
  0xb2   : > { %v626_v1 = vpack.c.bf16 %v624_v47, %v624_v47  ;;  %v627_v2 = vpack.c.bf16 %v625_v51, %v625_v51 }
  0xb4   : > { %v634_v16 = vsel %vm435_vm7, %v626_v1, 0  ;;  %v637_v17 = vsel %vm435_vm7, %v627_v2, 0  ;;  %v1038_v1 = vld [vmem:[%s1476_s4 + $0x6] sm:$0x3] }
  0xb8   : > { %562 = vrot.lane.b32.xlu0 %v390_v24, %s1231_s25  ;;  %505 = vrot.lane.b32.xlu2 %v390_v24, %s1229_s23 }
  0xb9   : > { %413 = vrot.lane.b32.xlu1 %v390_v24, %s1230_s24 }
  0xc0   : > { %667 = vrot.lane.b32.xlu0 %v389_v19, %s1232_s26  ;;  %560 = vrot.lane.b32.xlu2 %v389_v19, %s1231_s25 }
  0xc1   : > { %393 = vrot.lane.b32.xlu1 %v390_v24, %s1228_s22 }
  0xc8   : > { %840 = vrot.lane.b32.xlu0 %v390_v24, %s1233_s10  ;;  %726 = vrot.lane.b32.xlu2 %v390_v24, %s1234_s12 }
  0xc9   : > { %724 = vrot.lane.b32.xlu1 %v389_v19, %s1234_s12  ;;  %s1062_s12 = sshll.u32 %s1302_s9, 3 }
  0xd0   : > { %898 = vperm.xlu0 %1124, %v895_v25   ;;  %838 = vrot.lane.b32.xlu2 %v389_v19, %s1233_s10 }
  0xd1   : > { %669 = vrot.lane.b32.xlu1 %v390_v24, %s1232_s26  ;;  %s313_s26 = sand.u32 1, %s1214_s28  }
  0xd2   : > { %s1025_s10 = sshll.u32 %s313_s26, 3  ;;  %s932_s21 = scalar_lea.sflag [#allocation4], %s313_s26 }
  0xd3   : > { %s315_s9 = scalar_lea.vmem [#allocation5], %s1025_s10  ;;  %s1176_s10 = scalar_lea.hbm %s1480_s8, 16 }
  0xd4   : > { %s945_s19 = sshll.u32 %s315_s9, 4  ;;  %s946_s19 = int_to_ptr.vmem [resolvable:$true] %s945_s19 }
  0xd8   : > { %783 = vrot.lane.b32.xlu2 %v390_v24, %s1235_s18 }
  0xd9   : > { %781 = vrot.lane.b32.xlu1 %v389_v19, %s1235_s18  ;;  %s943_s18 = scalar_lea.hbm %s1480_s8, %s1062_s12 }
  0xda   : > { %s947_s20 = sshll.u32 %s943_s18, 4  ;;  %s948_s20 = int_to_ptr.hbm [resolvable:$true] %s947_s20 }
  0xdb   : > { %s1170_s22 = sshra.s32 %s948_s20, 4  ;;  %s1171_s22 = int_to_ptr.hbm [resolvable:$true] %s1170_s22 }
  0xdc   : > { %s1172_s23 = scalar_lea.hbm %s1171_s22, 8  ;;  %p1177_p3 = scmp.lt.s32.totalorder %s1171_s22, %s1480_s8 }
  0xdd   : > { %p1173_p0 = scmp.ne.s32.totalorder %s1171_s22, %s1172_s23  ;;  %p1178_p4 = scmp.lt.s32.totalorder %s1176_s10, %s1172_s23 }
  0xdf   : > { %p1174_p1 = pnand %p1173_p0, %p1319_p5  ;;  %p1179_p7 = por %p1178_p4, %p1177_p3 }
  0xe1   : > { %p1175_p2 = pneg %p1174_p1 }
  0xe3   : > { %p1180_p8 = pnand %p1179_p7, %p1175_p2 }
 0x10a   : > { %v504_v26 = vpop.permute.xlu2 %503 }
 0x112   : > { %v506_v31 = vpop.permute.xlu2 %505 }
 0x113   : > { %v508_v37 = vsel %vm507_vm4, %v504_v26, %v506_v31  ;;  %v509_v38 = vsel %vm507_vm4, %v506_v31, %v504_v26  ;;  %v734_v26 = vperm.slane %v732_v20, 0  ;;  %v410_v31 = vld [vmem:[%s1476_s4] sm:$0x3]  ;;  %v1047_v20 = vld [vmem:[%s1476_s4 + $0xc] sm:$0x3] }
 0x114   : > { %v517_v43 = vmul.f32 %v513_v34, %v509_v38  ;;  %v518_v44 = vmul.f32 %v514_v35, %v508_v37  ;;  %v675_v38 = vld [vmem:[#allocation2 + $0x5] ss:$8 sm:$0x3] }
 0x116   : > { %v519_v58 = vpack.c.bf16 %v517_v43, %v517_v43  ;;  %v520_v59 = vpack.c.bf16 %v518_v44, %v518_v44  ;;  %v678_v43 = vperm.slane %v675_v38, 1  ;;  %v1035_v44 = vld [vmem:[%s1476_s4 + $0x4] sm:$0x3] }
 0x118   : > { %v527_v8 = vsel %vm435_vm7, %v519_v58, 0  ;;  %v530_v9 = vsel %vm435_vm7, %v520_v59, 0 }
 0x11a   : > { %v561_v52 = vpop.permute.xlu2 %560 }
 0x122   : > { %v392_v29 = vpop.permute.xlu0 %391  ;;  %v727_v21 = vpop.permute.xlu2 %726 }
 0x123   : > { %v412_v32 = vpop.permute.xlu1 %411 }
 0x12a   : > { %v563_v48 = vpop.permute.xlu0 %562  ;;  %v839_v39 = vpop.permute.xlu2 %838 }
 0x12b   : > { %v414_v46 = vpop.permute.xlu1 %413  ;;  %v565_v60 = vsel %vm564_vm6, %v561_v52, %v563_v48  ;;  %v566_v61 = vsel %vm564_vm6, %v563_v48, %v561_v52 }
 0x12c   : > { %v416_v49 = vsel %vm415_vm5, %v412_v32, %v414_v46  ;;  %v417_v50 = vsel %vm415_vm5, %v414_v46, %v412_v32  ;;  %v574_v6 = vmul.f32 %v570_v56, %v566_v61  ;;  %v575_v7 = vmul.f32 %v571_v57, %v565_v60  ;;  %v846_v46 = vld [vmem:[#allocation2 + $0x10] ss:$8 sm:$0x3] }
 0x12d   : > { %v425_v53 = vmul.f32 %v421_v41, %v417_v50  ;;  %v426_v54 = vmul.f32 %v422_v42, %v416_v49  ;;  %v677_v42 = vperm.slane %v675_v38, 0  ;;  %v848_v57 = vperm.slane %v846_v46, 0 }
 0x12e   : > { %v576_v18 = vpack.c.bf16 %v574_v6, %v574_v6  ;;  %v577_v19 = vpack.c.bf16 %v575_v7, %v575_v7  ;;  %v849_v58 = vperm.slane %v846_v46, 1 }
 0x12f   : > { %v427_v62 = vpack.c.bf16 %v425_v53, %v425_v53  ;;  %v428_v63 = vpack.c.bf16 %v426_v54, %v426_v54  ;;  %v789_v53 = vld [vmem:[#allocation2 + $0x7] ss:$8 sm:$0x3] }
 0x130   : > { %v587_v30 = vsel %vm435_vm7, %v577_v19, 0  ;;  %v791_v59 = vperm.slane %v789_v53, 0  ;;  %v1044_v19 = vld [vmem:[%s1476_s4 + $0xa] sm:$0x3] }
 0x131   : > { %v437_v3 = vsel %vm435_vm7, %v427_v62, 0  ;;  %v440_v4 = vsel %vm435_vm7, %v428_v63, 0  ;;  %v792_v63 = vperm.slane %v789_v53, 1 }
 0x132   : > { %449 = vmatpush.bf16.msra.mxu2 %v437_v3  ;;  %462 = vmatpush.bf16.msra.mxu3 %v440_v4  ;;  %v668_v33 = vpop.permute.xlu0 %667  ;;  %v784_v2 = vpop.permute.xlu2 %783 }
 0x133   : > { %v394_v11 = vpop.permute.xlu1 %393 }
 0x134   : > { %v398_v12 = vsel %vm397_vm8, %v392_v29, %v394_v11  ;;  %v399_v13 = vsel %vm397_vm8, %v394_v11, %v392_v29  ;;  %v584_v29 = vsel %vm435_vm7, %v576_v18, 0  ;;  %v903_v18 = vld [vmem:[%s1478_s6] sm:$0xf] }
 0x135   : > { %v406_v14 = vmul.f32 %v402_v0, %v399_v13  ;;  %v407_v15 = vmul.f32 %v403_v5, %v398_v12  ;;  %1031 = vmatmul.msk.bf16.vlgmr.msra.gmra.mxu2 %vm431_vm9, %v1030_v10  ;;  %1032 = vmatmul.msk.bf16.vlgmr.msra.gmra.mxu3 %vm431_vm9, %v1030_v10 }
 0x136   : > { %539 = vmatpush.bf16.msrb.mxu2 %v527_v8  ;;  %552 = vmatpush.bf16.msrb.mxu3 %v530_v9 }
 0x137   : > { %v408_v22 = vpack.c.bf16 %v406_v14, %v406_v14  ;;  %v409_v23 = vpack.c.bf16 %v407_v15, %v407_v15  ;;  %v1041_v15 = vld [vmem:[%s1476_s4 + $0x8] sm:$0x3]  ;;  %906 = vperm.xlu1 %1125, %v903_v18  }
 0x139   : > { %v472_v24 = vsel %vm435_vm7, %v408_v22, 0  ;;  %v475_v25 = vsel %vm435_vm7, %v409_v23, 0  ;;  %v1053_v22 = vld [vmem:[%s1476_s4 + $0x10] sm:$0x3] }
 0x13a   : > { %646 = vmatpush.bf16.msra.mxu2 %v634_v16  ;;  %659 = vmatpush.bf16.msra.mxu3 %v637_v17  ;;  %v841_v54 = vpop.permute.xlu0 %840 }
 0x13b   : > { %484 = vmatpush.bf16.msrb.mxu0 %v472_v24  ;;  %497 = vmatpush.bf16.msrb.mxu1 %v475_v25  ;;  %v725_v32 = vpop.permute.xlu1 %724  ;;  %v843_v60 = vsel %vm842_vm12, %v839_v39, %v841_v54  ;;  %v844_v0 = vsel %vm842_vm12, %v841_v54, %v839_v39 }
 0x13c   : > { %v729_v34 = vsel %vm728_vm10, %v725_v32, %v727_v21  ;;  %v730_v35 = vsel %vm728_vm10, %v727_v21, %v725_v32  ;;  %v852_v4 = vmul.f32 %v848_v57, %v843_v60  ;;  %v853_v28 = vmul.f32 %v849_v58, %v844_v0  ;;  %v1050_v21 = vld [vmem:[%s1476_s4 + $0xe] sm:$0x3] }
 0x13d   : > { %v738_v36 = vmul.f32 %v734_v26, %v729_v34  ;;  %v739_v37 = vmul.f32 %v735_v27, %v730_v35 }
 0x13e   : > { %1033 = vmatmul.msk.bf16.vlgmr.msrb.gmra.mxu0 %vm431_vm9, %v410_v31  ;;  %1034 = vmatmul.msk.bf16.vlgmr.msrb.gmra.mxu1 %vm431_vm9, %v410_v31  ;;  %v854_v11 = vpack.c.bf16 %v852_v4, %v852_v4  ;;  %v855_v12 = vpack.c.bf16 %v853_v28, %v853_v28 }
 0x13f   : > { %596 = vmatpush.bf16.msra.mxu0 %v584_v29  ;;  %609 = vmatpush.bf16.msra.mxu1 %v587_v30  ;;  %v740_v40 = vpack.c.bf16 %v738_v36, %v738_v36  ;;  %v741_v41 = vpack.c.bf16 %v739_v37, %v739_v37 }
 0x140   : > { %v862_v16 = vsel %vm435_vm7, %v854_v11, 0  ;;  %v865_v17 = vsel %vm435_vm7, %v855_v12, 0 }
 0x141   : > { %v748_v51 = vsel %vm435_vm7, %v740_v40, 0  ;;  %v751_v52 = vsel %vm435_vm7, %v741_v41, 0 }
 0x143   : > { %v670_v45 = vpop.permute.xlu1 %669 }
 0x144   : > { %v672_v47 = vsel %vm671_vm11, %v668_v33, %v670_v45  ;;  %v673_v48 = vsel %vm671_vm11, %v670_v45, %v668_v33 }
 0x145   : > { %v681_v49 = vmul.f32 %v677_v42, %v672_v47  ;;  %v682_v50 = vmul.f32 %v678_v43, %v673_v48  ;;  %1036 = vmatmul.msk.bf16.vlgmr.msrb.gmra.mxu2 %vm431_vm9, %v1035_v44  ;;  %1037 = vmatmul.msk.bf16.vlgmr.msrb.gmra.mxu3 %vm431_vm9, %v1035_v44 }
 0x146   : > { %760 = vmatpush.bf16.msrb.mxu2 %v748_v51  ;;  %773 = vmatpush.bf16.msrb.mxu3 %v751_v52 }
 0x147   : > { %v683_v55 = vpack.c.bf16 %v681_v49, %v681_v49  ;;  %v684_v56 = vpack.c.bf16 %v682_v50, %v682_v50 }
 0x149   : > { %v691_v61 = vsel %vm435_vm7, %v683_v55, 0  ;;  %v694_v62 = vsel %vm435_vm7, %v684_v56, 0 }
 0x14a   : > { %703 = vmatpush.bf16.msrb.mxu0 %v691_v61  ;;  %716 = vmatpush.bf16.msrb.mxu1 %v694_v62 }
 0x14b   : > { %v782_v3 = vpop.permute.xlu1 %781 }
 0x14c   : > { %v786_v5 = vsel %vm785_vm13, %v782_v3, %v784_v2  ;;  %v787_v6 = vsel %vm785_vm13, %v784_v2, %v782_v3 }
 0x14d   : > { %v795_v7 = vmul.f32 %v791_v59, %v786_v5  ;;  %v796_v8 = vmul.f32 %v792_v63, %v787_v6 }
 0x14e   : > { %1039 = vmatmul.msk.bf16.vlgmr.msra.gmra.mxu0 %vm431_vm9, %v1038_v1  ;;  %1040 = vmatmul.msk.bf16.vlgmr.msra.gmra.mxu1 %vm431_vm9, %v1038_v1 }
 0x14f   : > { %v797_v9 = vpack.c.bf16 %v795_v7, %v795_v7  ;;  %v798_v10 = vpack.c.bf16 %v796_v8, %v796_v8 }
 0x151   : > { %v805_v13 = vsel %vm435_vm7, %v797_v9, 0  ;;  %v808_v14 = vsel %vm435_vm7, %v798_v10, 0  ;;  %v899_v9 = vpop.permute.xlu0 %898 }
 0x152   : > { %817 = vmatpush.bf16.msra.mxu0 %v805_v13  ;;  %830 = vmatpush.bf16.msra.mxu1 %v808_v14 }
 0x155   : > { %1042 = vmatmul.msk.bf16.vlgmr.msra.gmra.mxu2 %vm431_vm9, %v1041_v15  ;;  %1043 = vmatmul.msk.bf16.vlgmr.msra.gmra.mxu3 %vm431_vm9, %v1041_v15  ;;  %v919_v15 = vld.sshfl [vmem:[#allocation1 + $0x8] sm:$0xff pattern:$0x75316420] }
 0x156   : > { %874 = vmatpush.bf16.msra.mxu2 %v862_v16  ;;  %887 = vmatpush.bf16.msra.mxu3 %v865_v17 }
 0x15e   : > { %1045 = vmatmul.msk.bf16.vlgmr.msrb.gmra.mxu0 %vm431_vm9, %v1044_v19  ;;  %1046 = vmatmul.msk.bf16.vlgmr.msrb.gmra.mxu1 %vm431_vm9, %v1044_v19 }
 0x165   : > { %1048 = vmatmul.msk.bf16.vlgmr.msrb.gmra.mxu2 %vm431_vm9, %v1047_v20  ;;  %1049 = vmatmul.msk.bf16.vlgmr.msrb.gmra.mxu3 %vm431_vm9, %v1047_v20  ;;  %v918_v20 = vld.sshfl [vmem:[#allocation1] sm:$0xff pattern:$0x75316420] }
 0x16e   : > { %1051 = vmatmul.msk.bf16.vlgmr.msra.gmra.mxu0 %vm431_vm9, %v1050_v21  ;;  %1052 = vmatmul.msk.bf16.vlgmr.msra.gmra.mxu1 %vm431_vm9, %v1050_v21 }
 0x175   : > { %1054 = vmatmul.msk.bf16.vlgmr.msra.gmra.mxu2 %vm431_vm9, %v1053_v22  ;;  %1055 = vmatmul.msk.bf16.vlgmr.msra.gmra.mxu3 %vm431_vm9, %v1053_v22 }
 0x1a9   : > { %v907_v10 = vpop.permute.xlu1 %906 }
 0x1b8   : > { %v451_v23 = vpop.f32.mrf.mxu2  ;;  %v464_v24 = vpop.f32.mrf.mxu3 }
 0x1bb   : > { %v486_v25 = vpop.f32.mrf.mxu0  ;;  %v499_v26 = vpop.f32.mrf.mxu1 }
 0x1bc   : > { %v487_v48 = vadd.f32 %v486_v25, %v451_v23  ;;  %v500_v49 = vadd.f32 %v499_v26, %v464_v24 }
 0x1c0   : > { %v453_v27 = vpop.f32.mrf.mxu2  ;;  %v466_v29 = vpop.f32.mrf.mxu3 }
 0x1c3   : > { %v488_v30 = vpop.f32.mrf.mxu0  ;;  %v501_v31 = vpop.f32.mrf.mxu1 }
 0x1c8   : > { %v541_v32 = vpop.f32.mrf.mxu2  ;;  %v554_v33 = vpop.f32.mrf.mxu3 }
 0x1c9   : > { %v558_v50 = vadd.f32 %v541_v32, %v487_v48  ;;  %v559_v51 = vadd.f32 %v554_v33, %v500_v49 }
 0x1cb   : > { %v598_v34 = vpop.f32.mrf.mxu0  ;;  %v611_v35 = vpop.f32.mrf.mxu1 }
 0x1cc   : > { %v615_v56 = vadd.f32 %v598_v34, %v558_v50  ;;  %v616_v57 = vadd.f32 %v611_v35, %v559_v51 }
 0x1d0   : > { %v543_v36 = vpop.f32.mrf.mxu2  ;;  %v556_v37 = vpop.f32.mrf.mxu3 }
 0x1d3   : > { %v600_v38 = vpop.f32.mrf.mxu0  ;;  %v613_v39 = vpop.f32.mrf.mxu1 }
 0x1d8   : > { %v648_v40 = vpop.f32.mrf.mxu2  ;;  %v661_v41 = vpop.f32.mrf.mxu3 }
 0x1d9   : > { %v665_v58 = vadd.f32 %v648_v40, %v615_v56  ;;  %v666_v59 = vadd.f32 %v661_v41, %v616_v57 }
 0x1db   : > { %v705_v42 = vpop.f32.mrf.mxu0  ;;  %v718_v43 = vpop.f32.mrf.mxu1 }
 0x1dc   : > { %v722_v62 = vadd.f32 %v705_v42, %v665_v58  ;;  %v723_v63 = vadd.f32 %v718_v43, %v666_v59 }
 0x1e0   : > { %v650_v44 = vpop.f32.mrf.mxu2  ;;  %v663_v45 = vpop.f32.mrf.mxu3 }
 0x1e3   : > { %v707_v46 = vpop.f32.mrf.mxu0  ;;  %v720_v47 = vpop.f32.mrf.mxu1 }
 0x1e8   : > { %v762_v52 = vpop.f32.mrf.mxu2  ;;  %v775_v53 = vpop.f32.mrf.mxu3 }
 0x1e9   : > { %v779_v2 = vadd.f32 %v762_v52, %v722_v62  ;;  %v780_v3 = vadd.f32 %v775_v53, %v723_v63 }
 0x1eb   : > { %v819_v54 = vpop.f32.mrf.mxu0  ;;  %v832_v55 = vpop.f32.mrf.mxu1 }
 0x1ec   : > { %v836_v4 = vadd.f32 %v819_v54, %v779_v2  ;;  %v837_v5 = vadd.f32 %v832_v55, %v780_v3 }
 0x1f0   : > { %v764_v60 = vpop.f32.mrf.mxu2  ;;  %v777_v61 = vpop.f32.mrf.mxu3 }
 0x1f3   : > { %v834_v0 = vpop.f32.mrf.mxu1  ;;  %v821_v1 = vpop.f32.mrf.mxu0 }
 0x1f8   : > { %v876_v6 = vpop.f32.mrf.mxu2  ;;  %v889_v28 = vpop.f32.mrf.mxu3 }
 0x1f9   : > { %v893_v7 = vadd.f32 %v876_v6, %v836_v4  ;;  %v894_v8 = vadd.f32 %v889_v28, %v837_v5 }
 0x1fb   : > { %v902_v11 = vmul.f32 %v899_v9, %v894_v8  ;;  %v901_v12 = vmul.f32 %v899_v9, %v893_v7 }
 0x1fd   : > { %v909_v13 = vadd.f32 %v907_v10, %v901_v12  ;;  %v910_v14 = vadd.f32 %v907_v10, %v902_v11 }
 0x1ff   : > { %vm911_vm14 = vcmp.gt.f32.partialorder %v909_v13, 0.0  ;;  %vm912_vm15 = vcmp.gt.f32.partialorder %v910_v14, 0.0  ;;  %v913_v16 = vmul.f32 0.1, %v909_v13  ;;  %v914_v17 = vmul.f32 0.1, %v910_v14 }
 0x200   : > { %v878_v18 = vpop.f32.mrf.mxu2  ;;  %v891_v19 = vpop.f32.mrf.mxu3 }
 0x201   : > { %v915_v21 = vsel %vm911_vm14, %v909_v13, %v913_v16  ;;  %v916_v22 = vsel %vm912_vm15, %v910_v14, %v914_v17 }
 0x202   : > { %v923_v23 = vadd.f32 %v919_v15, %v916_v22  ;;  %v922_v24 = vadd.f32 %v918_v20, %v915_v21 }
 0x204   : > { %v926_v25 = vrot.slane %v923_v23, 4 }
 0x206   : > { %v928_v26 = vsel %vm927_vm0, %v922_v24, %v926_v25 }
 0x207   : > { %930 = vst [vmem:[%s315_s9] sm:$0xff] %v928_v26 }
 0x208   : > { %1183 = shalt.err (!%p1180_p8)
}
 0x209   : > { %1067 = dma.vmem_to_hbm [thread:$0]  (%p1319_p5), %s946_s19, 128, %s948_s20, %s932_s21  }
 0x20a PF: > { %p1079_p9 = scmp.ge.s32.totalorder %s1222_s30, 2  ;;  %s959_s26 = sand.u32 1, %s1210_s27  }
 0x20b   : > { %s960_s17 = scalar_lea.sflag [#allocation4], %s959_s26 }
 0x20c   : > { %p1074_p10 = pnand %p1079_p9, %p1323_p6 }
 0x20e   : > { %p1075_p11 = pneg %p1074_p10 }
 0x210   : > { %1205 = dma.done.wait (%p1075_p11), %s960_s17, 128  }
 0x211   : > { %1207 = vsyncadd (%p1075_p11), %s960_s17, 4294967168  ;;  %p19_p12 = scmp.ge.s32.totalorder %s1306_s11, 4   ;;  %s1483_s27 = smov %s1214_s28 }
 0x212   : > { %s1484_s28 = smov %s1218_s29  ;;  %s1485_s29 = smov %s1317_s14 }
 0x213   : > { %s1486_s30 = smov %s1306_s11  ;;  %21 = sbr.rel (!%p19_p12) target bundleno = 4 (0x4), region = 108 }
 0x218   :  { %966 = vsyncpa [#allocation3], 1 }
 0x219   :  { %968 = vsyncpa [#allocation3 + $0x1], 1 }
 0x21a   :  { %969 = vsyncpa [#allocation4], 1 }
 0x21b   :  { %971 = vsyncpa [#allocation4 + $0x1], 1 }

</bundles_post_ra>
